<compile_context>
chip_gen: v7x
topology: tpu7x:2x2x1
jax: 0.10.0
libtpu: 0.0.40
codegen_flags: <defaults>
</compile_context>

<pallas_src>
import jax
import jax.numpy as jnp
from jax.experimental import pallas as pl
from jax.experimental.pallas import tpu as pltpu


def _make_dma_copy_kernel(rows, n_chunks):
    """HBM->HBM identity copy in `n_chunks` overlapping DMAs (no VMEM staging)."""

    def kernel(x_hbm, o_hbm, sem):
        base = rows // n_chunks
        rem = rows % n_chunks
        copies = []
        start = 0
        for c in range(n_chunks):
            size = base + (1 if c < rem else 0)
            if size == 0:
                continue
            cp = pltpu.make_async_copy(
                x_hbm.at[pl.ds(start, size)],
                o_hbm.at[pl.ds(start, size)],
                sem.at[c],
            )
            cp.start()
            copies.append(cp)
            start += size
        # All DMAs are in flight; now drain them.
        for cp in copies:
            cp.wait()

    return kernel


def _hbm_copy(x2d, n_chunks):
    rows, lanes = x2d.shape
    itemsize = jnp.dtype(x2d.dtype).itemsize
    total_bytes = rows * lanes * itemsize
    return pl.pallas_call(
        _make_dma_copy_kernel(rows, n_chunks),
        out_shape=jax.ShapeDtypeStruct((rows, lanes), x2d.dtype),
        in_specs=[pl.BlockSpec(memory_space=pl.ANY)],
        out_specs=pl.BlockSpec(memory_space=pl.ANY),
        scratch_shapes=[pltpu.SemaphoreType.DMA((n_chunks,))],
        cost_estimate=pl.CostEstimate(
            flops=0, transcendentals=0, bytes_accessed=2 * total_bytes
        ),
    )(x2d)


def reshape_data(x, seq_len, is_input=True, materialize=False):
    """Pallas equivalent of ReshapeData.forward.

    is_input=True : (B, S, H)    -> (B, 1, S, H)   (x.unsqueeze(1))
    is_input=False: (B, 1, S, H) -> (B, S, H)      (x.squeeze(1))

    materialize=False (default): metadata-only reshape, zero HBM traffic.
    materialize=True           : fresh output buffer written by a direct
                                 HBM->HBM DMA Pallas kernel (no VMEM staging).
    """
    if is_input:
        B, S, H = x.shape
        assert S == seq_len
        out_shape = (B, 1, S, H)
    else:
        B, one, S, H = x.shape
        assert one == 1 and S == seq_len
        out_shape = (B, S, H)

    if not materialize:
        # unsqueeze/squeeze of a size-1 axis is pure metadata: no kernel.
        return x.reshape(out_shape)

    # --- materialized path: chunked HBM->HBM DMA copy ---
    total = x.size
    # Flatten to a contiguous 2D view (metadata-only).  Lane width is
    # irrelevant for the DMA engine, but keep it 128-friendly when possible.
    lanes = 128 if total % 128 == 0 else x.shape[-1]
    rows = total // lanes

    # A few in-flight DMAs keep the HBM pipes busy without per-step overhead.
    n_chunks = max(1, min(4, rows))

    x2d = x.reshape(rows, lanes)          # metadata-only (contiguous)
    y2d = _hbm_copy(x2d, n_chunks)        # one HBM read + one HBM write, DMA-only
    return y2d.reshape(out_shape)         # metadata-only (contiguous)


if __name__ == "__main__":
    key = jax.random.PRNGKey(0)
    B, S, H = 2, 8, 32  # batch=2, seq_len=8, hidden=32

    x_in = jax.random.normal(key, (B, S, H), dtype=jnp.float32)

    # --- default (metadata-only) path, both directions ---
    y_meta = reshape_data(x_in, seq_len=S, is_input=True)
    y_meta = jax.block_until_ready(y_meta)
    assert y_meta.shape == (B, 1, S, H)
    assert jnp.allclose(y_meta[:, 0], x_in)

    z_meta = reshape_data(y_meta, seq_len=S, is_input=False)
    z_meta = jax.block_until_ready(z_meta)
    assert z_meta.shape == (B, S, H)
    assert jnp.allclose(z_meta, x_in)

    # --- materialized path (exercises the Pallas HBM->HBM DMA kernel) ---
    y_mat = reshape_data(x_in, seq_len=S, is_input=True, materialize=True)
    y_mat = jax.block_until_ready(y_mat)
    assert y_mat.shape == (B, 1, S, H)
    assert jnp.allclose(y_mat[:, 0], x_in)

    z_mat = reshape_data(y_mat, seq_len=S, is_input=False, materialize=True)
    z_mat = jax.block_until_ready(z_mat)
    assert z_mat.shape == (B, S, H)
    assert jnp.allclose(z_mat, x_in)

    print("KERNEL_OK")
</pallas_src>

<mosaic_0001>
module attributes {stable_mosaic.version = 11 : i64} {
  func.func @kernel(%arg0: memref<4x128xf32, #tpu.memory_space<any>>, %arg1: memref<4x128xf32, #tpu.memory_space<any>>, %arg2: memref<4x!tpu.dma_semaphore, #tpu.memory_space<semaphore_mem>>) attributes {dimension_semantics = [], scalar_prefetch = 0 : i64, scratch_operands = 1 : i64, tpu.core_type = #tpu.core_type<tc>} {
    %c0_i32 = arith.constant 0 : i32
    %c0_i32_0 = arith.constant 0 : i32
    %c0_i32_1 = arith.constant 0 : i32
    %0 = tpu.memref_slice %arg0[%c0_i32_0, %c0_i32_1] : memref<4x128xf32, #tpu.memory_space<any>> -> memref<1x128xf32, #tpu.memory_space<any>>
    %c0_i32_2 = arith.constant 0 : i32
    %c0_i32_3 = arith.constant 0 : i32
    %1 = tpu.memref_slice %arg1[%c0_i32_2, %c0_i32_3] : memref<4x128xf32, #tpu.memory_space<any>> -> memref<1x128xf32, #tpu.memory_space<any>>
    %2 = tpu.memref_slice %arg2[%c0_i32] : memref<4x!tpu.dma_semaphore, #tpu.memory_space<semaphore_mem>> -> memref<1x!tpu.dma_semaphore, #tpu.memory_space<semaphore_mem>>
    %3 = tpu.memref_squeeze %2 : memref<1x!tpu.dma_semaphore, #tpu.memory_space<semaphore_mem>> -> memref<!tpu.dma_semaphore, #tpu.memory_space<semaphore_mem>>
    tpu.enqueue_dma source(%0 : memref<1x128xf32, #tpu.memory_space<any>>) target(%1 : memref<1x128xf32, #tpu.memory_space<any>>) target_semaphore(%3 : memref<!tpu.dma_semaphore, #tpu.memory_space<semaphore_mem>>)
    %c1_i32 = arith.constant 1 : i32
    %c1_i32_4 = arith.constant 1 : i32
    %c0_i32_5 = arith.constant 0 : i32
    %4 = tpu.memref_slice %arg0[%c1_i32_4, %c0_i32_5] : memref<4x128xf32, #tpu.memory_space<any>> -> memref<1x128xf32, #tpu.memory_space<any>>
    %c1_i32_6 = arith.constant 1 : i32
    %c0_i32_7 = arith.constant 0 : i32
    %5 = tpu.memref_slice %arg1[%c1_i32_6, %c0_i32_7] : memref<4x128xf32, #tpu.memory_space<any>> -> memref<1x128xf32, #tpu.memory_space<any>>
    %6 = tpu.memref_slice %arg2[%c1_i32] : memref<4x!tpu.dma_semaphore, #tpu.memory_space<semaphore_mem>> -> memref<1x!tpu.dma_semaphore, #tpu.memory_space<semaphore_mem>>
    %7 = tpu.memref_squeeze %6 : memref<1x!tpu.dma_semaphore, #tpu.memory_space<semaphore_mem>> -> memref<!tpu.dma_semaphore, #tpu.memory_space<semaphore_mem>>
    tpu.enqueue_dma source(%4 : memref<1x128xf32, #tpu.memory_space<any>>) target(%5 : memref<1x128xf32, #tpu.memory_space<any>>) target_semaphore(%7 : memref<!tpu.dma_semaphore, #tpu.memory_space<semaphore_mem>>)
    %c2_i32 = arith.constant 2 : i32
    %c2_i32_8 = arith.constant 2 : i32
    %c0_i32_9 = arith.constant 0 : i32
    %8 = tpu.memref_slice %arg0[%c2_i32_8, %c0_i32_9] : memref<4x128xf32, #tpu.memory_space<any>> -> memref<1x128xf32, #tpu.memory_space<any>>
    %c2_i32_10 = arith.constant 2 : i32
    %c0_i32_11 = arith.constant 0 : i32
    %9 = tpu.memref_slice %arg1[%c2_i32_10, %c0_i32_11] : memref<4x128xf32, #tpu.memory_space<any>> -> memref<1x128xf32, #tpu.memory_space<any>>
    %10 = tpu.memref_slice %arg2[%c2_i32] : memref<4x!tpu.dma_semaphore, #tpu.memory_space<semaphore_mem>> -> memref<1x!tpu.dma_semaphore, #tpu.memory_space<semaphore_mem>>
    %11 = tpu.memref_squeeze %10 : memref<1x!tpu.dma_semaphore, #tpu.memory_space<semaphore_mem>> -> memref<!tpu.dma_semaphore, #tpu.memory_space<semaphore_mem>>
    tpu.enqueue_dma source(%8 : memref<1x128xf32, #tpu.memory_space<any>>) target(%9 : memref<1x128xf32, #tpu.memory_space<any>>) target_semaphore(%11 : memref<!tpu.dma_semaphore, #tpu.memory_space<semaphore_mem>>)
    %c3_i32 = arith.constant 3 : i32
    %c3_i32_12 = arith.constant 3 : i32
    %c0_i32_13 = arith.constant 0 : i32
    %12 = tpu.memref_slice %arg0[%c3_i32_12, %c0_i32_13] : memref<4x128xf32, #tpu.memory_space<any>> -> memref<1x128xf32, #tpu.memory_space<any>>
    %c3_i32_14 = arith.constant 3 : i32
    %c0_i32_15 = arith.constant 0 : i32
    %13 = tpu.memref_slice %arg1[%c3_i32_14, %c0_i32_15] : memref<4x128xf32, #tpu.memory_space<any>> -> memref<1x128xf32, #tpu.memory_space<any>>
    %14 = tpu.memref_slice %arg2[%c3_i32] : memref<4x!tpu.dma_semaphore, #tpu.memory_space<semaphore_mem>> -> memref<1x!tpu.dma_semaphore, #tpu.memory_space<semaphore_mem>>
    %15 = tpu.memref_squeeze %14 : memref<1x!tpu.dma_semaphore, #tpu.memory_space<semaphore_mem>> -> memref<!tpu.dma_semaphore, #tpu.memory_space<semaphore_mem>>
    tpu.enqueue_dma source(%12 : memref<1x128xf32, #tpu.memory_space<any>>) target(%13 : memref<1x128xf32, #tpu.memory_space<any>>) target_semaphore(%15 : memref<!tpu.dma_semaphore, #tpu.memory_space<semaphore_mem>>)
    %c0_i32_16 = arith.constant 0 : i32
    %c0_i32_17 = arith.constant 0 : i32
    %c0_i32_18 = arith.constant 0 : i32
    %16 = tpu.memref_slice %arg0[%c0_i32_17, %c0_i32_18] : memref<4x128xf32, #tpu.memory_space<any>> -> memref<1x128xf32, #tpu.memory_space<any>>
    %c0_i32_19 = arith.constant 0 : i32
    %c0_i32_20 = arith.constant 0 : i32
    %17 = tpu.memref_slice %arg1[%c0_i32_19, %c0_i32_20] : memref<4x128xf32, #tpu.memory_space<any>> -> memref<1x128xf32, #tpu.memory_space<any>>
    %18 = tpu.memref_slice %arg2[%c0_i32_16] : memref<4x!tpu.dma_semaphore, #tpu.memory_space<semaphore_mem>> -> memref<1x!tpu.dma_semaphore, #tpu.memory_space<semaphore_mem>>
    %19 = tpu.memref_squeeze %18 : memref<1x!tpu.dma_semaphore, #tpu.memory_space<semaphore_mem>> -> memref<!tpu.dma_semaphore, #tpu.memory_space<semaphore_mem>>
    tpu.wait_dma2 semaphore(%19 : memref<!tpu.dma_semaphore, #tpu.memory_space<semaphore_mem>>) src(%16 : memref<1x128xf32, #tpu.memory_space<any>>) dst(%17 : memref<1x128xf32, #tpu.memory_space<any>>)
    %c1_i32_21 = arith.constant 1 : i32
    %c1_i32_22 = arith.constant 1 : i32
    %c0_i32_23 = arith.constant 0 : i32
    %20 = tpu.memref_slice %arg0[%c1_i32_22, %c0_i32_23] : memref<4x128xf32, #tpu.memory_space<any>> -> memref<1x128xf32, #tpu.memory_space<any>>
    %c1_i32_24 = arith.constant 1 : i32
    %c0_i32_25 = arith.constant 0 : i32
    %21 = tpu.memref_slice %arg1[%c1_i32_24, %c0_i32_25] : memref<4x128xf32, #tpu.memory_space<any>> -> memref<1x128xf32, #tpu.memory_space<any>>
    %22 = tpu.memref_slice %arg2[%c1_i32_21] : memref<4x!tpu.dma_semaphore, #tpu.memory_space<semaphore_mem>> -> memref<1x!tpu.dma_semaphore, #tpu.memory_space<semaphore_mem>>
    %23 = tpu.memref_squeeze %22 : memref<1x!tpu.dma_semaphore, #tpu.memory_space<semaphore_mem>> -> memref<!tpu.dma_semaphore, #tpu.memory_space<semaphore_mem>>
    tpu.wait_dma2 semaphore(%23 : memref<!tpu.dma_semaphore, #tpu.memory_space<semaphore_mem>>) src(%20 : memref<1x128xf32, #tpu.memory_space<any>>) dst(%21 : memref<1x128xf32, #tpu.memory_space<any>>)
    %c2_i32_26 = arith.constant 2 : i32
    %c2_i32_27 = arith.constant 2 : i32
    %c0_i32_28 = arith.constant 0 : i32
    %24 = tpu.memref_slice %arg0[%c2_i32_27, %c0_i32_28] : memref<4x128xf32, #tpu.memory_space<any>> -> memref<1x128xf32, #tpu.memory_space<any>>
    %c2_i32_29 = arith.constant 2 : i32
    %c0_i32_30 = arith.constant 0 : i32
    %25 = tpu.memref_slice %arg1[%c2_i32_29, %c0_i32_30] : memref<4x128xf32, #tpu.memory_space<any>> -> memref<1x128xf32, #tpu.memory_space<any>>
    %26 = tpu.memref_slice %arg2[%c2_i32_26] : memref<4x!tpu.dma_semaphore, #tpu.memory_space<semaphore_mem>> -> memref<1x!tpu.dma_semaphore, #tpu.memory_space<semaphore_mem>>
    %27 = tpu.memref_squeeze %26 : memref<1x!tpu.dma_semaphore, #tpu.memory_space<semaphore_mem>> -> memref<!tpu.dma_semaphore, #tpu.memory_space<semaphore_mem>>
    tpu.wait_dma2 semaphore(%27 : memref<!tpu.dma_semaphore, #tpu.memory_space<semaphore_mem>>) src(%24 : memref<1x128xf32, #tpu.memory_space<any>>) dst(%25 : memref<1x128xf32, #tpu.memory_space<any>>)
    %c3_i32_31 = arith.constant 3 : i32
    %c3_i32_32 = arith.constant 3 : i32
    %c0_i32_33 = arith.constant 0 : i32
    %28 = tpu.memref_slice %arg0[%c3_i32_32, %c0_i32_33] : memref<4x128xf32, #tpu.memory_space<any>> -> memref<1x128xf32, #tpu.memory_space<any>>
    %c3_i32_34 = arith.constant 3 : i32
    %c0_i32_35 = arith.constant 0 : i32
    %29 = tpu.memref_slice %arg1[%c3_i32_34, %c0_i32_35] : memref<4x128xf32, #tpu.memory_space<any>> -> memref<1x128xf32, #tpu.memory_space<any>>
    %30 = tpu.memref_slice %arg2[%c3_i32_31] : memref<4x!tpu.dma_semaphore, #tpu.memory_space<semaphore_mem>> -> memref<1x!tpu.dma_semaphore, #tpu.memory_space<semaphore_mem>>
    %31 = tpu.memref_squeeze %30 : memref<1x!tpu.dma_semaphore, #tpu.memory_space<semaphore_mem>> -> memref<!tpu.dma_semaphore, #tpu.memory_space<semaphore_mem>>
    tpu.wait_dma2 semaphore(%31 : memref<!tpu.dma_semaphore, #tpu.memory_space<semaphore_mem>>) src(%28 : memref<1x128xf32, #tpu.memory_space<any>>) dst(%29 : memref<1x128xf32, #tpu.memory_space<any>>)
    return
  }
}

</mosaic_0001>

<bundles_post_ra>
// kernel: tpu_custom_call.1
= control target key start
LH: loop header
LB: loop body
LE: loop exit
PB: predicated region body
PF: predicated region fallthrough
CT: control target
= control target key end

     0   :  { %s124_s9 = smov [#allocation2]   ;;  %s125_s10 = smov [#allocation3]   ;;  %s167_s0 = inlined_call_operand.hbm [shape: f32[4,128], index: 0, kind: input, shape index: {}]   ;;  %s168_s1 = inlined_call_operand.hbm [shape: f32[4,128], index: 1, kind: output, shape index: {}]  }
   0x1   :  { %s19_s8 = scalar_lea.hbm %s167_s0, 16  ;;  %s126_s11 = smov 0  }
   0x2   :  { %18 = dma.general %s167_s0, 16, %s168_s1, %s124_s9, %s125_s10, [#allocation4], %s126_s11, 0  }
   0x3   :  { %s20_s18 = scalar_lea.hbm %s168_s1, 16  ;;  %s35_s21 = scalar_lea.hbm %s167_s0, 32 }
   0x4   :  { %s127_s22 = smov [#allocation2 + $0x1]   ;;  %s128_s23 = smov [#allocation5]  }
   0x5   :  { %34 = dma.general %s19_s8, 16, %s20_s18, %s127_s22, %s128_s23, [#allocation6], %s126_s11, 0  }
   0x6   :  { %s36_s26 = scalar_lea.hbm %s168_s1, 32  ;;  %s51_s29 = scalar_lea.hbm %s167_s0, 48 }
   0x7   :  { %s129_s30 = smov [#allocation2 + $0x2]   ;;  %s130_s2 = smov [#allocation7]  }
   0x8   :  { %50 = dma.general %s35_s21, 16, %s36_s26, %s129_s30, %s130_s2, [#allocation8], %s126_s11, 0  }
   0x9   :  { %s52_s5 = scalar_lea.hbm %s168_s1, 48  ;;  %s131_s6 = smov [#allocation2 + $0x3]  }
   0xa   :  { %s132_s7 = smov [#allocation9]  }
   0xb   :  { %66 = dma.general %s51_s29, 16, %s52_s5, %s131_s6, %s132_s7, [#allocation10], %s126_s11, 0  }
   0xc   :  { %116 = dma.done.wait [#allocation2], 16 }
   0xd   :  { %117 = vsyncadd [#allocation2], 4294967280 }
   0xe   :  { %118 = dma.done.wait [#allocation2 + $0x1], 16 }
   0xf   :  { %119 = vsyncadd [#allocation2 + $0x1], 4294967280 }
  0x10   :  { %120 = dma.done.wait [#allocation2 + $0x2], 16 }
  0x11   :  { %121 = vsyncadd [#allocation2 + $0x2], 4294967280 }
  0x12   :  { %122 = dma.done.wait [#allocation2 + $0x3], 16 }
  0x13   :  { %123 = vsyncadd [#allocation2 + $0x3], 4294967280 }
  0x14   :  { %76 = vsyncmov [#allocation2] }
  0x17   :  { %s77_s0 = vpop.sfrf %76 }
  0x18   :  { %p103_p0 = scmp.ne.s32.totalorder %s77_s0, 0 }
  0x1a   :  { %81 = shalt.err (%p103_p0)  }
  0x1b   :  { %83 = vsyncmov [#allocation2 + $0x1] }
  0x1e   :  { %s84_s8 = vpop.sfrf %83 }
  0x1f   :  { %p104_p1 = scmp.ne.s32.totalorder %s84_s8, 0 }
  0x21   :  { %88 = shalt.err (%p104_p1)  }
  0x22   :  { %90 = vsyncmov [#allocation2 + $0x2] }
  0x25   :  { %s91_s1 = vpop.sfrf %90 }
  0x26   :  { %p105_p2 = scmp.ne.s32.totalorder %s91_s1, 0 }
  0x28   :  { %95 = shalt.err (%p105_p2)  }
  0x29   :  { %97 = vsyncmov [#allocation2 + $0x3] }
  0x2c   :  { %s98_s9 = vpop.sfrf %97 }
  0x2d   :  { %p106_p3 = scmp.ne.s32.totalorder %s98_s9, 0 }
  0x2f   :  { %102 = shalt.err (%p106_p3)  }

</bundles_post_ra>
